<compile_context>
chip_gen: v5e
topology: v5e:2x2
jax: 0.10.0
libtpu: 0.0.40
codegen_flags: <defaults>
</compile_context>

<pallas_src>
import jax
import jax.numpy as jnp
from jax.experimental import pallas as pl
from jax.experimental.pallas import tpu as pltpu

_LANE = 128
_SUBLANE = 8
_MIN_PALLAS_BATCH = 128  # below this, fused XLA beats pallas launch overhead


def _round_up(n, m):
    return ((n + m - 1) // m) * m


def mlp_kernel(x_ref, w1_ref, b1_ref, w2_ref, b2_ref, o_ref):
    # fc1 on the MXU: f32 -> bf16 cast of x happens here (VPU work that hides
    # under the matmul), f32 accumulation.
    x = x_ref[...].astype(jnp.bfloat16)
    h = jnp.dot(x, w1_ref[...], preferred_element_type=jnp.float32)
    # Bias add + ReLU in f32 on the VPU (v5e has no bf16 elementwise units).
    h = jnp.maximum(h + b1_ref[...], 0.0)
    # fc2 on the MXU: re-quantize activations to bf16, accumulate in f32.
    out = jnp.dot(h.astype(jnp.bfloat16), w2_ref[...],
                  preferred_element_type=jnp.float32)
    # bf16, lane-dense (padded-to-128) output store.
    o_ref[...] = (out + b2_ref[...]).astype(o_ref.dtype)


def prep_params(w1_t, b1, w2_t, b2):
    """One-time parameter prep (hoisted out of the forward pass).

    w1_t: (input_dim, hidden)  -- transposed nn.Linear.weight
    b1:   (hidden,) or (1, hidden)
    w2_t: (hidden, output_dim)
    b2:   (output_dim,) or (1, output_dim)

    Only the lane (last) dims are zero-padded to multiples of 128; the fc1
    contraction dim (input_dim) is left as-is so x never needs host padding.
    Zero-padded hidden columns stay exactly 0 through ReLU and contribute 0
    to fc2; zero-padded output columns are sliced off -> numerically exact.
    """
    d_in, hidden = w1_t.shape
    d_out = w2_t.shape[1]
    hid_p = _round_up(hidden, _LANE)
    d_out_p = _round_up(d_out, _LANE)

    w1p = jnp.zeros((d_in, hid_p), jnp.bfloat16).at[:, :hidden].set(
        w1_t.astype(jnp.bfloat16))
    b1p = jnp.zeros((1, hid_p), jnp.float32).at[:, :hidden].set(
        jnp.reshape(b1, (1, hidden)).astype(jnp.float32))
    w2p = jnp.zeros((hid_p, d_out_p), jnp.bfloat16).at[:hidden, :d_out].set(
        w2_t.astype(jnp.bfloat16))
    b2p = jnp.zeros((1, d_out_p), jnp.float32).at[:, :d_out].set(
        jnp.reshape(b2, (1, d_out)).astype(jnp.float32))
    return {"w1": w1p, "b1": b1p, "w2": w2p, "b2": b2p,
            "d_in": d_in, "hidden": hidden, "d_out": d_out}


def _pick_batch_tile(B):
    if B < 256:
        return _round_up(max(B, _SUBLANE), _SUBLANE)
    # Mem-bound roofline prefers big batch tiles (512/1024 ~ 85% of HBM BW),
    # but keep >= 2 grid steps so ("parallel",) can use both v7x TensorCores.
    for tb in (1024, 512, 256):
        if B >= 2 * tb:
            return tb
    return 256


def linear_classifier_forward(x, params):
    """relu(x @ W1 + b1) @ W2 + b2, with params from prep_params. Returns f32."""
    w1p, b1p, w2p, b2p = params["w1"], params["b1"], params["w2"], params["b2"]
    d_out = params["d_out"]
    B, d_in = x.shape
    assert d_in == params["d_in"]
    hid_p = w1p.shape[1]
    d_out_p = w2p.shape[1]

    if B < _MIN_PALLAS_BATCH:
        # Tiny-batch fallback: XLA's fused dot+relu+dot is strictly faster
        # than a pallas_call launch at this size on every TPU generation.
        h = jnp.maximum(
            jnp.dot(x.astype(jnp.bfloat16), w1p,
                    preferred_element_type=jnp.float32) + b1p, 0.0)
        out = jnp.dot(h.astype(jnp.bfloat16), w2p,
                      preferred_element_type=jnp.float32) + b2p
        return out[:, :d_out]

    TB = _pick_batch_tile(B)
    B_pad = _round_up(B, TB)
    # Batch-pad only when needed (padded rows are sliced off afterwards).
    xp = x if B_pad == B else jnp.zeros((B_pad, d_in), x.dtype).at[:B].set(x)

    cost = pl.CostEstimate(
        flops=2 * B_pad * (d_in * hid_p + hid_p * d_out_p),
        transcendentals=0,
        bytes_accessed=(xp.size * 4            # x read (f32)
                        + w1p.size * 2 + w2p.size * 2   # bf16 weights
                        + b1p.size * 4 + b2p.size * 4   # f32 biases
                        + B_pad * d_out_p * 2),         # bf16 output write
    )

    out_padded = pl.pallas_call(
        mlp_kernel,
        out_shape=jax.ShapeDtypeStruct((B_pad, d_out_p), jnp.bfloat16),
        grid=(B_pad // TB,),
        in_specs=[
            pl.BlockSpec((TB, d_in), lambda i: (i, 0)),        # x: batch-tiled, f32
            pl.BlockSpec((d_in, hid_p), lambda i: (0, 0)),     # w1: VMEM-resident
            pl.BlockSpec((1, hid_p), lambda i: (0, 0)),        # b1
            pl.BlockSpec((hid_p, d_out_p), lambda i: (0, 0)),  # w2: VMEM-resident
            pl.BlockSpec((1, d_out_p), lambda i: (0, 0)),      # b2
        ],
        out_specs=pl.BlockSpec((TB, d_out_p), lambda i: (i, 0)),
        compiler_params=pltpu.CompilerParams(
            dimension_semantics=("parallel",),
        ),
        cost_estimate=cost,
    )(xp, w1p, b1p, w2p, b2p)

    # TODO(synk): in a real pipeline, fuse this slice/cast into the consumer
    # instead of materializing the (B, d_out) f32 array here.
    return out_padded[:B, :d_out].astype(jnp.float32)


def init_params(key, input_dim=42, hidden_dim=128, output_dim=26):
    # Deterministic synthetic init (PyTorch-like uniform bounds).
    k1, k2, k3, k4 = jax.random.split(key, 4)
    bound1 = 1.0 / jnp.sqrt(input_dim)
    bound2 = 1.0 / jnp.sqrt(hidden_dim)
    # Stored transposed relative to nn.Linear.weight: (in, out)
    w1_t = jax.random.uniform(k1, (input_dim, hidden_dim), jnp.float32, -bound1, bound1)
    b1 = jax.random.uniform(k2, (1, hidden_dim), jnp.float32, -bound1, bound1)
    w2_t = jax.random.uniform(k3, (hidden_dim, output_dim), jnp.float32, -bound2, bound2)
    b2 = jax.random.uniform(k4, (1, output_dim), jnp.float32, -bound2, bound2)
    return w1_t, b1, w2_t, b2


if __name__ == "__main__":
    key = jax.random.PRNGKey(0)
    kx1, kx2, kp = jax.random.split(key, 3)

    input_dim, hidden_dim, output_dim = 42, 128, 26
    w1_t, b1, w2_t, b2 = init_params(kp, input_dim, hidden_dim, output_dim)
    params = prep_params(w1_t, b1, w2_t, b2)   # one-time pad + bf16 cast

    def ref_fn(x):
        # Reference in plain f32 JAX (same math as the PyTorch module).
        return jnp.maximum(x @ w1_t + b1, 0.0) @ w2_t + b2

    # 1) Pallas kernel path (batch big enough to amortize launch cost;
    #    B=512 -> TB=256, grid=(2,), exercises batch tiling + parallel axis).
    x_big = jax.random.normal(kx1, (512, input_dim), jnp.float32)
    out_big = jax.block_until_ready(linear_classifier_forward(x_big, params))
    ref_big = ref_fn(x_big)
    assert out_big.shape == (512, output_dim)
    assert jnp.allclose(out_big, ref_big, atol=5e-2, rtol=5e-2), (
        float(jnp.max(jnp.abs(out_big - ref_big))))

    # 2) Tiny-batch fallback path (plain XLA, per perf review).
    x_small = jax.random.normal(kx2, (8, input_dim), jnp.float32)
    out_small = jax.block_until_ready(linear_classifier_forward(x_small, params))
    ref_small = ref_fn(x_small)
    assert out_small.shape == (8, output_dim)
    assert jnp.allclose(out_small, ref_small, atol=5e-2, rtol=5e-2), (
        float(jnp.max(jnp.abs(out_small - ref_small))))

    print("KERNEL_OK")
</pallas_src>

<mosaic_0001>
module attributes {stable_mosaic.version = 11 : i64} {
  func.func @mlp_kernel(%arg0: i32, %arg1: memref<256x42xf32, #tpu.memory_space<vmem>>, %arg2: memref<42x128xbf16, #tpu.memory_space<vmem>>, %arg3: memref<1x128xf32, #tpu.memory_space<vmem>>, %arg4: memref<128x128xbf16, #tpu.memory_space<vmem>>, %arg5: memref<1x128xf32, #tpu.memory_space<vmem>>, %arg6: memref<256x128xbf16, #tpu.memory_space<vmem>>) attributes {dimension_semantics = [#tpu.dimension_semantics<parallel>], iteration_bounds = array<i64: 2>, scalar_prefetch = 0 : i64, scratch_operands = 0 : i64, tpu.core_type = #tpu.core_type<tc>, window_params = [{transform_indices = @transform_0, window_bounds = array<i64: 256, 42>}, {pipeline_mode = #tpu.pipeline_mode<synchronous>, transform_indices = @transform_1, window_bounds = array<i64: 42, 128>}, {pipeline_mode = #tpu.pipeline_mode<synchronous>, transform_indices = @transform_2, window_bounds = array<i64: 1, 128>}, {pipeline_mode = #tpu.pipeline_mode<synchronous>, transform_indices = @transform_3, window_bounds = array<i64: 128, 128>}, {pipeline_mode = #tpu.pipeline_mode<synchronous>, transform_indices = @transform_4, window_bounds = array<i64: 1, 128>}, {transform_indices = @transform_5, window_bounds = array<i64: 256, 128>}]} {
    %c0 = arith.constant 0 : index
    %c0_0 = arith.constant 0 : index
    %0 = vector.load %arg1[%c0, %c0_0] : memref<256x42xf32, #tpu.memory_space<vmem>>, vector<256x42xf32>
    %1 = arith.truncf %0 : vector<256x42xf32> to vector<256x42xbf16>
    %c0_1 = arith.constant 0 : index
    %c0_2 = arith.constant 0 : index
    %2 = vector.load %arg2[%c0_1, %c0_2] : memref<42x128xbf16, #tpu.memory_space<vmem>>, vector<42x128xbf16>
    %cst = arith.constant dense<0.000000e+00> : vector<256x128xf32>
    %3 = tpu.matmul %1, %2, %cst {dimension_numbers = #tpu.dot_dimension_numbers<[1], [0], [0], [1], [0, 0, 1, 1], [], []>} : vector<256x42xbf16>, vector<42x128xbf16>, vector<256x128xf32> -> vector<256x128xf32>
    %c0_3 = arith.constant 0 : index
    %c0_4 = arith.constant 0 : index
    %4 = vector.load %arg3[%c0_3, %c0_4] : memref<1x128xf32, #tpu.memory_space<vmem>>, vector<1x128xf32>
    %5 = vector.broadcast %4 : vector<1x128xf32> to vector<256x128xf32>
    %6 = arith.addf %3, %5 : vector<256x128xf32>
    %cst_5 = arith.constant 0.000000e+00 : f32
    %7 = vector.broadcast %cst_5 : f32 to vector<256x128xf32>
    %8 = arith.maximumf %6, %7 : vector<256x128xf32>
    %9 = arith.truncf %8 : vector<256x128xf32> to vector<256x128xbf16>
    %c0_6 = arith.constant 0 : index
    %c0_7 = arith.constant 0 : index
    %10 = vector.load %arg4[%c0_6, %c0_7] : memref<128x128xbf16, #tpu.memory_space<vmem>>, vector<128x128xbf16>
    %cst_8 = arith.constant dense<0.000000e+00> : vector<256x128xf32>
    %11 = tpu.matmul %9, %10, %cst_8 {dimension_numbers = #tpu.dot_dimension_numbers<[1], [0], [0], [1], [0, 0, 1, 1], [], []>} : vector<256x128xbf16>, vector<128x128xbf16>, vector<256x128xf32> -> vector<256x128xf32>
    %c0_9 = arith.constant 0 : index
    %c0_10 = arith.constant 0 : index
    %12 = vector.load %arg5[%c0_9, %c0_10] : memref<1x128xf32, #tpu.memory_space<vmem>>, vector<1x128xf32>
    %13 = vector.broadcast %12 : vector<1x128xf32> to vector<256x128xf32>
    %14 = arith.addf %11, %13 : vector<256x128xf32>
    %15 = arith.truncf %14 : vector<256x128xf32> to vector<256x128xbf16>
    %c0_11 = arith.constant 0 : index
    %c0_12 = arith.constant 0 : index
    %16 = vector.load %arg6[%c0_11, %c0_12] : memref<256x128xbf16, #tpu.memory_space<vmem>>, vector<256x128xbf16>
    tpu.vector_store %arg6[%c0_11, %c0_12], %15 {strides = array<i32>} : memref<256x128xbf16, #tpu.memory_space<vmem>>, vector<256x128xbf16>,
    return
  }
  func.func @transform_0(%arg0: i32) -> (i32, i32) {
    %c0_i32 = arith.constant 0 : i32
    %c0_i32_0 = arith.constant 0 : i32
    return %arg0, %c0_i32 : i32, i32
  }
  func.func @transform_1(%arg0: i32) -> (i32, i32) {
    %c0_i32 = arith.constant 0 : i32
    %c0_i32_0 = arith.constant 0 : i32
    %c0_i32_1 = arith.constant 0 : i32
    return %c0_i32, %c0_i32_0 : i32, i32
  }
  func.func @transform_2(%arg0: i32) -> (i32, i32) {
    %c0_i32 = arith.constant 0 : i32
    %c0_i32_0 = arith.constant 0 : i32
    %c0_i32_1 = arith.constant 0 : i32
    return %c0_i32, %c0_i32_0 : i32, i32
  }
  func.func @transform_3(%arg0: i32) -> (i32, i32) {
    %c0_i32 = arith.constant 0 : i32
    %c0_i32_0 = arith.constant 0 : i32
    %c0_i32_1 = arith.constant 0 : i32
    return %c0_i32, %c0_i32_0 : i32, i32
  }
  func.func @transform_4(%arg0: i32) -> (i32, i32) {
    %c0_i32 = arith.constant 0 : i32
    %c0_i32_0 = arith.constant 0 : i32
    %c0_i32_1 = arith.constant 0 : i32
    return %c0_i32, %c0_i32_0 : i32, i32
  }
  func.func @transform_5(%arg0: i32) -> (i32, i32) {
    %c0_i32 = arith.constant 0 : i32
    %c0_i32_0 = arith.constant 0 : i32
    return %arg0, %c0_i32 : i32, i32
  }
}

</mosaic_0001>

<bundles_post_ra>
// kernel: tpu_custom_call.1
= control target key start
LH: loop header
LB: loop body
LE: loop exit
PB: predicated region body
PF: predicated region fallthrough
CT: control target
= control target key end

     0   :  { %10 = vsyncpa [#allocation3], 0  ;;  %s1387_s0 = inlined_call_operand.vmem [shape: f32[512,42], index: 0, kind: input, shape index: {}]   ;;  %s1388_s1 = inlined_call_operand.vmem [shape: bf16[42,128], index: 1, kind: input, shape index: {}]   ;;  %s1389_s2 = inlined_call_operand.vmem [shape: f32[1,128], index: 2, kind: input, shape index: {}]   ;;  %s1390_s3 = inlined_call_operand.vmem [shape: bf16[128,128], index: 3, kind: input, shape index: {}]   ;;  %s1391_s4 = inlined_call_operand.vmem [shape: f32[1,128], index: 4, kind: input, shape index: {}]   ;;  %s1392_s5 = inlined_call_operand.hbm [shape: bf16[512,128], index: 5, kind: output, shape index: {}]  }
   0x1   :  { %12 = vsyncpa [#allocation3 + $0x1], 0  ;;  %s1120_s18 = smov 0   ;;  %s1122_s19 = smov 0  }
   0x2   :  { %s1124_s20 = smov 0   ;;  %s1126_s21 = smov 0  }
   0x3 LB: > { %s1141_s22 = sadd.s32 4294967295, %s1086_s21   ;;  %s791_s23 = sadd.s32 4294967294, %s1086_s21   ;;  %s1086_s21 = sphi %s1126_s21, %s1398_s21   ;;  %s1082_s20 = sphi %s1124_s20, %s1397_s20   ;;  %s1078_s19 = sphi %s1122_s19, %s1396_s19   ;;  %s1074_s18 = sphi %s1120_s18, %s1395_s18  }
   0x4   : > { %s1145_s24 = sadd.s32 1, %s1086_s21   ;;  %s135_s25 = sadd.s32 1, %s1082_s20 }
   0x5   : > { %s132_s26 = ssub.s32 %s1086_s21, %s1145_s24  ;;  %p145_p0 = scmp.ne.s32.totalorder %s1082_s20, %s1078_s19 }
   0x6   : > { %p133_p1 = scmp.eq.s32.totalorder %s132_s26, 0  ;;  %p146_p2 = scmp.eq.s32.totalorder %s1141_s22, 1 }
   0x7   : > { %p151_p3 = scmp.ne.s32.totalorder %s1078_s19, %s1074_s18  ;;  %p152_p4 = scmp.eq.s32.totalorder %s791_s23, 1 }
   0x8   : > { %s1156_s27 = scalar_select %p133_p1, %s1082_s20, %s135_s25  }
   0x9   : > { %p1158_p5 = por %p146_p2, %p145_p0  ;;  %p1162_p6 = por %p152_p4, %p151_p3 }
   0xa   : > { %p794_p7 = scmp.ge.s32.totalorder %s1086_s21, 1  ;;  %p191_p8 = scmp.lt.s32.totalorder %s1086_s21, 3 }
   0xc   : > { %p192_p9 = pnand %p794_p7, %p191_p8 }
   0xd   : > { %s796_s9 = sshll.u32 (!%p192_p9), %s1141_s22, 5  ;;  %s1044_s26 = scalar_lea.hbm (!%p192_p9), %s1392_s5, 256 }
   0xe   : > { %195 = sbr.rel (%p192_p9) target bundleno = 562 (0x232), region = 40  ;;  %p220_p10 = scmp.lt.s32.totalorder (!%p192_p9), %s796_s9, 63 }
  0x13   : > { %v808_v0 = vld [vmem:[%s1388_s1 + $0x10] sm:$0xf]  ;;  %v865_v1 = vld [vmem:[%s1388_s1 + $0x10] sm:$0x10]  ;;  %vm351_vm0 = vcmask 1044480   ;;  %v864_v4 = vld [vmem:[%s1388_s1 + $0x8] sm:$0xff] }
  0x14   : > { %v809_v2 = vor.u32 %v865_v1, %v808_v0  ;;  %s1400_s9 = smov (!%p220_p10, %s796_s9), 63  ;;  %v863_v5 = vld [vmem:[%s1388_s1] sm:$0xff]  ;;  %vm302_vm1 = vcmask 343040   ;;  %v873_v21 = vld [vmem:[%s1390_s3 + $0x38] sm:$0xff]  ;;  %v872_v25 = vld [vmem:[%s1390_s3 + $0x30] sm:$0xff] }
  0x15   : > { %s797_s12 = sshll.u32 %s1400_s9, 3  ;;  %560 = vmatpush.bf16.msra.mxu1 %v873_v21  ;;  %973 = vmatpush.bf16.msra.mxu2 %v873_v21  ;;  %v871_v26 = vld [vmem:[%s1390_s3 + $0x28] sm:$0xff]  ;;  %v870_v27 = vld [vmem:[%s1390_s3 + $0x20] sm:$0xff]  ;;  %v869_v30 = vld [vmem:[%s1390_s3 + $0x18] sm:$0xff]  ;;  %s874_s9 = sshll.u32 %s1141_s22, 7 }
  0x16   : > { %v353_v3 = vsel %vm351_vm0, %v809_v2, 0  ;;  %s1181_s15 = scalar_lea.vmem %s1387_s0, %s797_s12  ;;  %v868_v32 = vld [vmem:[%s1390_s3 + $0x10] sm:$0xff]  ;;  %v867_v36 = vld [vmem:[%s1390_s3 + $0x8] sm:$0xff]  ;;  %v866_v37 = vld [vmem:[%s1390_s3] sm:$0xff]  ;;  %s725_s12 = scalar_lea.hbm %s1392_s5, %s874_s9 }
  0x17   : > { %360 = vmatpush.bf16.msra.mxu0 %v353_v3  ;;  %970 = vmatpush.bf16.msra.mxu3 %v353_v3  ;;  %v227_v6 = vld [vmem:[%s1181_s15] sm:$0xff]  ;;  %v228_v7 = vld [vmem:[%s1181_s15 + $0x8] sm:$0xff]  ;;  %v229_v9 = vld [vmem:[%s1181_s15 + $0x10] sm:$0xff]  ;;  %s728_s14 = sshll.u32 %s725_s12, 4  ;;  %s729_s14 = int_to_ptr.hbm [resolvable:$true] %s728_s14 }
  0x18   : > { %v259_v8 = vpack.c.bf16 %v228_v7, %v227_v6  ;;  %v230_v10 = vld [vmem:[%s1181_s15 + $0x18] sm:$0xff]  ;;  %v231_v12 = vld [vmem:[%s1181_s15 + $0x20] sm:$0xff]  ;;  %v232_v13 = vld [vmem:[%s1181_s15 + $0x28] sm:$0xff]  ;;  %s1038_s17 = sshra.s32 %s729_s14, 4  ;;  %s1039_s17 = int_to_ptr.hbm [resolvable:$true] %s1038_s17 }
  0x19   : > { %v260_v11 = vpack.c.bf16 %v230_v10, %v229_v9  ;;  %v261_v14 = vpack.c.bf16 %v232_v13, %v231_v12  ;;  %v233_v15 = vld [vmem:[%s1181_s15 + $0x30] sm:$0xff]  ;;  %v234_v16 = vld [vmem:[%s1181_s15 + $0x38] sm:$0xff]  ;;  %v235_v18 = vld [vmem:[%s1181_s15 + $0x40] sm:$0xff]  ;;  %561 = vmatpush.bf16.msra.mxu1 %v872_v25  ;;  %974 = vmatpush.bf16.msra.mxu2 %v872_v25  ;;  %s1040_s22 = scalar_lea.hbm %s1039_s17, 128  ;;  %p1045_p0 = scmp.lt.s32.totalorder %s1039_s17, %s1392_s5 }
  0x1a   : > { %v262_v17 = vpack.c.bf16 %v234_v16, %v233_v15  ;;  %v236_v19 = vld [vmem:[%s1181_s15 + $0x48] sm:$0xff]  ;;  %v237_v22 = vld [vmem:[%s1181_s15 + $0x50] sm:$0xff]  ;;  %v238_v23 = vld [vmem:[%s1181_s15 + $0x58] sm:$0xff]  ;;  %p1041_p11 = scmp.ne.s32.totalorder %s1039_s17, %s1040_s22  ;;  %p1046_p1 = scmp.lt.s32.totalorder %s1044_s26, %s1040_s22 }
  0x1b   : > { %361 = vmatpush.bf16.msra.mxu0 %v864_v4  ;;  %971 = vmatpush.bf16.msra.mxu3 %v864_v4  ;;  %v263_v20 = vpack.c.bf16 %v236_v19, %v235_v18  ;;  %v264_v24 = vpack.c.bf16 %v238_v23, %v237_v22  ;;  %v239_v28 = vld [vmem:[%s1181_s15 + $0x60] sm:$0xff]  ;;  %v240_v29 = vld [vmem:[%s1181_s15 + $0x68] sm:$0xff]  ;;  %v245_v33 = vld [vmem:[%s1181_s15 + $0x90] sm:$0xff] }
  0x1c   : > { %v265_v31 = vpack.c.bf16 %v240_v29, %v239_v28  ;;  %v246_v34 = vld [vmem:[%s1181_s15 + $0x98] sm:$0xff]  ;;  %v241_v38 = vld [vmem:[%s1181_s15 + $0x70] sm:$0xff]  ;;  %v247_v41 = vld [vmem:[%s1181_s15 + $0xa0] sm:$0xff]  ;;  %p1042_p12 = pnand %p1041_p11, %p1158_p5  ;;  %p1047_p2 = por %p1046_p1, %p1045_p0 }
  0x1d   : > { %562 = vmatpush.bf16.msra.mxu1 %v871_v26  ;;  %975 = vmatpush.bf16.msra.mxu2 %v871_v26  ;;  %v268_v35 = vpack.c.bf16 %v246_v34, %v245_v33  ;;  %v242_v39 = vld [vmem:[%s1181_s15 + $0x78] sm:$0xff]  ;;  %v248_v42 = vld [vmem:[%s1181_s15 + $0xa8] sm:$0xff]  ;;  %v243_v44 = vld [vmem:[%s1181_s15 + $0x80] sm:$0xff] }
  0x1e   : > { %v266_v40 = vpack.c.bf16 %v242_v39, %v241_v38  ;;  %v269_v43 = vpack.c.bf16 %v248_v42, %v247_v41  ;;  %v244_v45 = vld [vmem:[%s1181_s15 + $0x88] sm:$0xff]  ;;  %v249_v48 = vld [vmem:[%s1181_s15 + $0xb0] sm:$0xff]  ;;  %v250_v49 = vld [vmem:[%s1181_s15 + $0xb8] sm:$0xff]  ;;  %p1043_p13 = pneg %p1042_p12 }
  0x1f   : > { %362 = vmatpush.bf16.msra.mxu0 %v863_v5  ;;  %972 = vmatpush.bf16.msra.mxu3 %v863_v5  ;;  %v267_v46 = vpack.c.bf16 %v244_v45, %v243_v44  ;;  %v1247_v50 = vld [vmem:[%s1389_s2] ss:$0 sm:$0xff]  ;;  %v270_v51 = vpack.c.bf16 %v250_v49, %v249_v48  ;;  %v252_v60 = vld [vmem:[%s1181_s15 + $0xc8] sm:$0xff]  ;;  %v253_v5 = vld [vmem:[%s1181_s15 + $0xd0] sm:$0xff] }
  0x20   : > { %v251_v59 = vld [vmem:[%s1181_s15 + $0xc0] sm:$0xff]  ;;  %v254_v6 = vld [vmem:[%s1181_s15 + $0xd8] sm:$0xff]  ;;  %v256_v16 = vld [vmem:[%s1181_s15 + $0xe8] sm:$0xff]  ;;  %p1048_p3 = pnand %p1047_p2, %p1043_p13 }
  0x21   : > { %563 = vmatpush.bf16.msra.mxu1 %v870_v27  ;;  %976 = vmatpush.bf16.msra.mxu2 %v870_v27  ;;  %v271_v61 = vpack.c.bf16 %v252_v60, %v251_v59  ;;  %v272_v7 = vpack.c.bf16 %v254_v6, %v253_v5  ;;  %v255_v15 = vld [vmem:[%s1181_s15 + $0xe0] sm:$0xff]  ;;  %v257_v25 = vld [vmem:[%s1181_s15 + $0xf0] sm:$0xff]  ;;  %v258_v26 = vld [vmem:[%s1181_s15 + $0xf8] sm:$0xff]  ;;  %s216_s15 = sand.u32 1, %s1078_s19  }
  0x22   : > { %810 = vmatmul.msk.bf16.vlgmr.msra.gmra.mxu0 %vm302_vm1, %v259_v8  ;;  %819 = vmatmul.msk.bf16.vlgmr.msra.gmra.mxu3 %vm302_vm1, %v268_v35  ;;  %v274_v27 = vpack.c.bf16 %v258_v26, %v257_v25  ;;  %s795_s7 = sshll.u32 %s216_s15, 7  ;;  %s714_s16 = scalar_lea.sflag [#allocation3], %s216_s15 }
  0x23   : > { %s1293_s8 = scalar_lea.vmem [#allocation2], %s795_s7 }
  0x24   : > { %s726_s13 = sshll.u32 %s1293_s8, 4  ;;  %s727_s13 = int_to_ptr.vmem [resolvable:$true] %s726_s13 }
  0x25   : > { %564 = vmatpush.bf16.msra.mxu1 %v869_v30  ;;  %977 = vmatpush.bf16.msra.mxu2 %v869_v30 }
  0x29   : > { %565 = vmatpush.bf16.msra.mxu1 %v868_v32  ;;  %978 = vmatpush.bf16.msra.mxu2 %v868_v32 }
  0x2d   : > { %566 = vmatpush.bf16.msra.mxu1 %v867_v36  ;;  %979 = vmatpush.bf16.msra.mxu2 %v867_v36 }
  0x31   : > { %567 = vmatpush.bf16.msra.mxu1 %v866_v37  ;;  %980 = vmatpush.bf16.msra.mxu2 %v866_v37 }
  0x32   : > { %811 = vmatmul.msk.bf16.gmra.mxu0 %vm302_vm1, %v260_v11  ;;  %820 = vmatmul.msk.bf16.gmra.mxu3 %vm302_vm1, %v269_v43 }
  0x42   : > { %812 = vmatmul.msk.bf16.gmra.mxu0 %vm302_vm1, %v261_v14  ;;  %821 = vmatmul.msk.bf16.gmra.mxu3 %vm302_vm1, %v270_v51 }
  0x52   : > { %813 = vmatmul.msk.bf16.gmra.mxu0 %vm302_vm1, %v262_v17  ;;  %822 = vmatmul.msk.bf16.gmra.mxu3 %vm302_vm1, %v271_v61  ;;  %v273_v17 = vpack.c.bf16 %v256_v16, %v255_v15 }
  0x62   : > { %814 = vmatmul.msk.bf16.gmra.mxu0 %vm302_vm1, %v263_v20  ;;  %823 = vmatmul.msk.bf16.gmra.mxu3 %vm302_vm1, %v272_v7 }
  0x72   : > { %815 = vmatmul.msk.bf16.gmra.mxu0 %vm302_vm1, %v264_v24  ;;  %824 = vmatmul.msk.bf16.gmra.mxu3 %vm302_vm1, %v273_v17 }
  0x82   : > { %816 = vmatmul.msk.bf16.gmra.mxu0 %vm302_vm1, %v265_v31  ;;  %825 = vmatmul.msk.bf16.gmra.mxu3 %vm302_vm1, %v274_v27 }
  0x92   : > { %817 = vmatmul.msk.bf16.gmra.mxu0 %vm302_vm1, %v266_v40 }
  0x9f   : > { %v364_v47 = vpop.f32.mrf.mxu0 }
  0xa0   : > { %v365_v52 = vadd.f32 %v1247_v50, %v364_v47 }
  0xa2   : > { %818 = vmatmul.msk.bf16.gmra.mxu0 %vm302_vm1, %v267_v46  ;;  %v444_v55 = vmax.f32 %v365_v52, 0.0 }
  0xa5   : > { %v409_v49 = vpop.f32.mrf.mxu3 }
  0xa6   : > { %v410_v6 = vadd.f32 %v1247_v50, %v409_v49 }
  0xa7   : > { %v366_v53 = vpop.f32.mrf.mxu0 }
  0xa8   : > { %v367_v54 = vadd.f32 %v1247_v50, %v366_v53 }
  0xaa   : > { %v445_v56 = vmax.f32 %v367_v54, 0.0 }
  0xac   : > { %v476_v57 = vpack.c.bf16 %v445_v56, %v444_v55 }
  0xad   : > { %v411_v54 = vpop.f32.mrf.mxu3 }
  0xae   : > { %568 = vmatmul.bf16.vlgmr.msra.gmra.mxu1 %v476_v57 }
  0xaf   : > { %v369_v58 = vpop.f32.mrf.mxu0 }
  0xb0   : > { %v370_v62 = vadd.f32 %v1247_v50, %v369_v58 }
  0xb2   : > { %v446_v1 = vmax.f32 %v370_v62, 0.0 }
  0xb5   : > { %v414_v59 = vpop.f32.mrf.mxu3 }
  0xb7   : > { %v371_v63 = vpop.f32.mrf.mxu0 }
  0xb8   : > { %v372_v0 = vadd.f32 %v1247_v50, %v371_v63 }
  0xba   : > { %v447_v2 = vmax.f32 %v372_v0, 0.0 }
  0xbc   : > { %v477_v3 = vpack.c.bf16 %v447_v2, %v446_v1 }
  0xbe   : > { %573 = vmatmul.bf16.gmra.mxu1 %v477_v3  ;;  %v416_v3 = vpop.f32.mrf.mxu3 }
  0xbf   : > { %v374_v4 = vpop.f32.mrf.mxu0 }
  0xc0   : > { %v375_v8 = vadd.f32 %v1247_v50, %v374_v4  ;;  %v1285_v4 = vld [vmem:[%s1391_s4] ss:$0 sm:$0xff] }
  0xc2   : > { %v448_v11 = vmax.f32 %v375_v8, 0.0  ;;  %v412_v8 = vadd.f32 %v1247_v50, %v411_v54 }
  0xc7   : > { %v376_v9 = vpop.f32.mrf.mxu0 }
  0xc8   : > { %v377_v10 = vadd.f32 %v1247_v50, %v376_v9 }
  0xca   : > { %v449_v12 = vmax.f32 %v377_v10, 0.0 }
  0xcc   : > { %v478_v13 = vpack.c.bf16 %v449_v12, %v448_v11  ;;  %v419_v11 = vpop.f32.mrf.mxu3  ;;  %v462_v12 = vmax.f32 %v410_v6, 0.0 }
  0xce   : > { %578 = vmatmul.bf16.gmra.mxu1 %v478_v13  ;;  %v463_v13 = vmax.f32 %v412_v8, 0.0 }
  0xcf   : > { %v379_v14 = vpop.f32.mrf.mxu0 }
  0xd0   : > { %v380_v18 = vadd.f32 %v1247_v50, %v379_v14  ;;  %v485_v15 = vpack.c.bf16 %v463_v13, %v462_v12 }
  0xd2   : > { %v450_v21 = vmax.f32 %v380_v18, 0.0  ;;  %v415_v18 = vadd.f32 %v1247_v50, %v414_v59 }
  0xd4   : > { %v421_v16 = vpop.f32.mrf.mxu3 }
  0xd7   : > { %v381_v19 = vpop.f32.mrf.mxu0 }
  0xd8   : > { %v382_v20 = vadd.f32 %v1247_v50, %v381_v19 }
  0xda   : > { %v451_v22 = vmax.f32 %v382_v20, 0.0  ;;  %v417_v20 = vadd.f32 %v1247_v50, %v416_v3 }
  0xdc   : > { %v479_v23 = vpack.c.bf16 %v451_v22, %v450_v21  ;;  %v424_v26 = vpop.f32.mrf.mxu3 }
  0xde   : > { %583 = vmatmul.bf16.gmra.mxu1 %v479_v23  ;;  %v464_v23 = vmax.f32 %v415_v18, 0.0 }
  0xdf   : > { %v384_v24 = vpop.f32.mrf.mxu0 }
  0xe0   : > { %v385_v28 = vadd.f32 %v1247_v50, %v384_v24  ;;  %v465_v24 = vmax.f32 %v417_v20, 0.0 }
  0xe2   : > { %v452_v31 = vmax.f32 %v385_v28, 0.0  ;;  %v486_v27 = vpack.c.bf16 %v465_v24, %v464_v23 }
  0xe7   : > { %v386_v29 = vpop.f32.mrf.mxu0 }
  0xe8   : > { %v387_v30 = vadd.f32 %v1247_v50, %v386_v29  ;;  %v420_v29 = vadd.f32 %v1247_v50, %v419_v11 }
  0xea   : > { %v453_v32 = vmax.f32 %v387_v30, 0.0 }
  0xec   : > { %v480_v33 = vpack.c.bf16 %v453_v32, %v452_v31  ;;  %v422_v31 = vadd.f32 %v1247_v50, %v421_v16 }
  0xee   : > { %588 = vmatmul.bf16.gmra.mxu1 %v480_v33  ;;  %v426_v33 = vpop.f32.mrf.mxu3 }
  0xef   : > { %v389_v34 = vpop.f32.mrf.mxu0 }
  0xf0   : > { %v390_v35 = vadd.f32 %v1247_v50, %v389_v34 }
  0xf2   : > { %v454_v38 = vmax.f32 %v390_v35, 0.0  ;;  %v466_v35 = vmax.f32 %v420_v29, 0.0 }
  0xf7   : > { %v391_v36 = vpop.f32.mrf.mxu0 }
  0xf8   : > { %v392_v37 = vadd.f32 %v1247_v50, %v391_v36  ;;  %v467_v36 = vmax.f32 %v422_v31, 0.0 }
  0xfa   : > { %v455_v39 = vmax.f32 %v392_v37, 0.0 }
  0xfc   : > { %v481_v40 = vpack.c.bf16 %v455_v39, %v454_v38  ;;  %v487_v38 = vpack.c.bf16 %v467_v36, %v466_v35  ;;  %v429_v39 = vpop.f32.mrf.mxu3 }
  0xfd   : > { %v430_v54 = vadd.f32 %v1247_v50, %v429_v39 }
  0xfe   : > { %593 = vmatmul.bf16.gmra.mxu1 %v481_v40 }
  0xff   : > { %v394_v41 = vpop.f32.mrf.mxu0  ;;  %v470_v59 = vmax.f32 %v430_v54, 0.0 }
 0x100   : > { %v395_v42 = vadd.f32 %v1247_v50, %v394_v41  ;;  %v425_v41 = vadd.f32 %v1247_v50, %v424_v26 }
 0x102   : > { %v456_v45 = vmax.f32 %v395_v42, 0.0 }
 0x107   : > { %v396_v43 = vpop.f32.mrf.mxu0 }
 0x108   : > { %v397_v44 = vadd.f32 %v1247_v50, %v396_v43  ;;  %v427_v43 = vadd.f32 %v1247_v50, %v426_v33 }
 0x10a   : > { %v457_v46 = vmax.f32 %v397_v44, 0.0 }
 0x10c   : > { %v482_v47 = vpack.c.bf16 %v457_v46, %v456_v45  ;;  %v468_v46 = vmax.f32 %v425_v41, 0.0 }
 0x10e   : > { %598 = vmatmul.bf16.gmra.mxu1 %v482_v47  ;;  %v469_v47 = vmax.f32 %v427_v43, 0.0 }
 0x10f   : > { %v399_v48 = vpop.f32.mrf.mxu0 }
 0x110   : > { %v400_v51 = vadd.f32 %v1247_v50, %v399_v48  ;;  %v431_v48 = vpop.f32.mrf.mxu3 }
 0x112   : > { %v458_v55 = vmax.f32 %v400_v51, 0.0  ;;  %v488_v51 = vpack.c.bf16 %v469_v47, %v468_v46 }
 0x117   : > { %v401_v52 = vpop.f32.mrf.mxu0 }
 0x118   : > { %v402_v53 = vadd.f32 %v1247_v50, %v401_v52 }
 0x11a   : > { %v459_v56 = vmax.f32 %v402_v53, 0.0  ;;  %v434_v53 = vpop.f32.mrf.mxu3 }
 0x11c   : > { %v483_v57 = vpack.c.bf16 %v459_v56, %v458_v55  ;;  %v432_v56 = vadd.f32 %v1247_v50, %v431_v48 }
 0x11e   : > { %603 = vmatmul.bf16.gmra.mxu1 %v483_v57 }
 0x11f   : > { %v404_v58 = vpop.f32.mrf.mxu0 }
 0x120   : > { %v405_v60 = vadd.f32 %v1247_v50, %v404_v58 }
 0x122   : > { %v460_v63 = vmax.f32 %v405_v60, 0.0  ;;  %v471_v60 = vmax.f32 %v432_v56, 0.0 }
 0x127   : > { %v406_v61 = vpop.f32.mrf.mxu0 }
 0x128   : > { %v407_v62 = vadd.f32 %v1247_v50, %v406_v61 }
 0x12a   : > { %v461_v0 = vmax.f32 %v407_v62, 0.0  ;;  %v489_v62 = vpack.c.bf16 %v471_v60, %v470_v59 }
 0x12b   : > { %v569_v1 = vpop.f32.mrf.mxu1 }
 0x12c   : > { %v484_v2 = vpack.c.bf16 %v461_v0, %v460_v63  ;;  %v570_v7 = vadd.f32 %v1285_v4, %v569_v1  ;;  %v436_v63 = vpop.f32.mrf.mxu3  ;;  %v435_v1 = vadd.f32 %v1247_v50, %v434_v53 }
 0x12d   : > { %v437_v3 = vadd.f32 %v1247_v50, %v436_v63 }
 0x12e   : > { %608 = vmatmul.bf16.vlgmr.msra.gmra.mxu2 %v484_v2  ;;  %v472_v8 = vmax.f32 %v435_v1, 0.0 }
 0x133   : > { %v571_v5 = vpop.f32.mrf.mxu1 }
 0x134   : > { %v572_v9 = vadd.f32 %v1285_v4, %v571_v5 }
 0x136   : > { %v878_v10 = vpack.c.bf16 %v572_v9, %v570_v7  ;;  %v439_v7 = vpop.f32.mrf.mxu3  ;;  %v473_v9 = vmax.f32 %v437_v3, 0.0 }
 0x138   : > { %879 = vst [vmem:[%s1293_s8] sm:$0xff] %v878_v10   ;;  %v490_v11 = vpack.c.bf16 %v473_v9, %v472_v8 }
 0x13b   : > { %v574_v14 = vpop.f32.mrf.mxu1 }
 0x13c   : > { %v575_v19 = vadd.f32 %v1285_v4, %v574_v14  ;;  %v440_v14 = vadd.f32 %v1247_v50, %v439_v7 }
 0x13e   : > { %613 = vmatmul.bf16.gmra.mxu2 %v485_v15  ;;  %v441_v12 = vpop.f32.mrf.mxu3 }
 0x13f   : > { %v442_v16 = vadd.f32 %v1247_v50, %v441_v12 }
 0x141   : > { %v475_v20 = vmax.f32 %v442_v16, 0.0 }
 0x143   : > { %v576_v17 = vpop.f32.mrf.mxu1 }
 0x144   : > { %v577_v21 = vadd.f32 %v1285_v4, %v576_v17 }
 0x146   : > { %v883_v22 = vpack.c.bf16 %v577_v21, %v575_v19  ;;  %v474_v19 = vmax.f32 %v440_v14, 0.0 }
 0x148   : > { %955 = vst [vmem:[%s1293_s8 + $0x8] sm:$0xff] %v883_v22   ;;  %v491_v22 = vpack.c.bf16 %v475_v20, %v474_v19 }
 0x14b   : > { %v579_v25 = vpop.f32.mrf.mxu1 }
 0x14c   : > { %v580_v30 = vadd.f32 %v1285_v4, %v579_v25 }
 0x14e   : > { %618 = vmatmul.bf16.gmra.mxu2 %v486_v27 }
 0x153   : > { %v581_v28 = vpop.f32.mrf.mxu1 }
 0x154   : > { %v582_v32 = vadd.f32 %v1285_v4, %v581_v28 }
 0x156   : > { %v888_v34 = vpack.c.bf16 %v582_v32, %v580_v30 }
 0x158   : > { %956 = vst [vmem:[%s1293_s8 + $0x10] sm:$0xff] %v888_v34  }
 0x15b   : > { %v584_v37 = vpop.f32.mrf.mxu1 }
 0x15c   : > { %v585_v42 = vadd.f32 %v1285_v4, %v584_v37 }
 0x15e   : > { %623 = vmatmul.bf16.gmra.mxu2 %v487_v38 }
 0x163   : > { %v586_v40 = vpop.f32.mrf.mxu1 }
 0x164   : > { %v587_v44 = vadd.f32 %v1285_v4, %v586_v40 }
 0x166   : > { %v893_v45 = vpack.c.bf16 %v587_v44, %v585_v42 }
 0x168   : > { %957 = vst [vmem:[%s1293_s8 + $0x18] sm:$0xff] %v893_v45  }
 0x16b   : > { %v589_v49 = vpop.f32.mrf.mxu1 }
 0x16c   : > { %v590_v55 = vadd.f32 %v1285_v4, %v589_v49 }
 0x16e   : > { %628 = vmatmul.bf16.gmra.mxu2 %v488_v51 }
 0x173   : > { %v591_v52 = vpop.f32.mrf.mxu1 }
 0x174   : > { %v592_v57 = vadd.f32 %v1285_v4, %v591_v52 }
 0x176   : > { %v898_v58 = vpack.c.bf16 %v592_v57, %v590_v55 }
 0x178   : > { %958 = vst [vmem:[%s1293_s8 + $0x20] sm:$0xff] %v898_v58  }
 0x17b   : > { %v594_v61 = vpop.f32.mrf.mxu1 }
 0x17c   : > { %v595_v2 = vadd.f32 %v1285_v4, %v594_v61 }
 0x17e   : > { %633 = vmatmul.bf16.gmra.mxu2 %v489_v62 }
 0x183   : > { %v596_v0 = vpop.f32.mrf.mxu1 }
 0x184   : > { %v597_v5 = vadd.f32 %v1285_v4, %v596_v0 }
 0x186   : > { %v903_v6 = vpack.c.bf16 %v597_v5, %v595_v2 }
 0x188   : > { %959 = vst [vmem:[%s1293_s8 + $0x28] sm:$0xff] %v903_v6  }
 0x18b   : > { %v599_v10 = vpop.f32.mrf.mxu1 }
 0x18c   : > { %v600_v15 = vadd.f32 %v1285_v4, %v599_v10 }
 0x18e   : > { %638 = vmatmul.bf16.gmra.mxu2 %v490_v11 }
 0x193   : > { %v601_v13 = vpop.f32.mrf.mxu1 }
 0x194   : > { %v602_v17 = vadd.f32 %v1285_v4, %v601_v13 }
 0x196   : > { %v908_v18 = vpack.c.bf16 %v602_v17, %v600_v15 }
 0x198   : > { %960 = vst [vmem:[%s1293_s8 + $0x30] sm:$0xff] %v908_v18  }
 0x19b   : > { %v604_v21 = vpop.f32.mrf.mxu1 }
 0x19c   : > { %v605_v24 = vadd.f32 %v1285_v4, %v604_v21 }
 0x19e   : > { %643 = vmatmul.bf16.gmra.mxu2 %v491_v22 }
 0x1a3   : > { %v606_v23 = vpop.f32.mrf.mxu1 }
 0x1a4   : > { %v607_v25 = vadd.f32 %v1285_v4, %v606_v23 }
 0x1a6   : > { %v913_v26 = vpack.c.bf16 %v607_v25, %v605_v24 }
 0x1a8   : > { %961 = vst [vmem:[%s1293_s8 + $0x38] sm:$0xff] %v913_v26  }
 0x1b1   : > { %v609_v27 = vpop.f32.mrf.mxu2 }
 0x1b2   : > { %v610_v28 = vadd.f32 %v1285_v4, %v609_v27 }
 0x1b9   : > { %v611_v50 = vpop.f32.mrf.mxu2 }
 0x1ba   : > { %v612_v29 = vadd.f32 %v1285_v4, %v611_v50 }
 0x1bc   : > { %v918_v30 = vpack.c.bf16 %v612_v29, %v610_v28 }
 0x1be   : > { %962 = vst [vmem:[%s1293_s8 + $0x40] sm:$0xff] %v918_v30  }
 0x1c1   : > { %v614_v31 = vpop.f32.mrf.mxu2 }
 0x1c2   : > { %v615_v33 = vadd.f32 %v1285_v4, %v614_v31 }
 0x1c9   : > { %v616_v32 = vpop.f32.mrf.mxu2 }
 0x1ca   : > { %v617_v34 = vadd.f32 %v1285_v4, %v616_v32 }
 0x1cc   : > { %v923_v35 = vpack.c.bf16 %v617_v34, %v615_v33 }
 0x1ce   : > { %963 = vst [vmem:[%s1293_s8 + $0x48] sm:$0xff] %v923_v35  }
 0x1d1   : > { %v619_v36 = vpop.f32.mrf.mxu2 }
 0x1d2   : > { %v620_v38 = vadd.f32 %v1285_v4, %v619_v36 }
 0x1d9   : > { %v621_v37 = vpop.f32.mrf.mxu2 }
 0x1da   : > { %v622_v39 = vadd.f32 %v1285_v4, %v621_v37 }
 0x1dc   : > { %v928_v40 = vpack.c.bf16 %v622_v39, %v620_v38 }
 0x1de   : > { %964 = vst [vmem:[%s1293_s8 + $0x50] sm:$0xff] %v928_v40  }
 0x1e1   : > { %v624_v41 = vpop.f32.mrf.mxu2 }
 0x1e2   : > { %v625_v43 = vadd.f32 %v1285_v4, %v624_v41 }
 0x1e9   : > { %v626_v42 = vpop.f32.mrf.mxu2 }
 0x1ea   : > { %v627_v44 = vadd.f32 %v1285_v4, %v626_v42 }
 0x1ec   : > { %v933_v45 = vpack.c.bf16 %v627_v44, %v625_v43 }
 0x1ee   : > { %965 = vst [vmem:[%s1293_s8 + $0x58] sm:$0xff] %v933_v45  }
 0x1f1   : > { %v629_v46 = vpop.f32.mrf.mxu2 }
 0x1f2   : > { %v630_v48 = vadd.f32 %v1285_v4, %v629_v46 }
 0x1f9   : > { %v631_v47 = vpop.f32.mrf.mxu2 }
 0x1fa   : > { %v632_v49 = vadd.f32 %v1285_v4, %v631_v47 }
 0x1fc   : > { %v938_v51 = vpack.c.bf16 %v632_v49, %v630_v48 }
 0x1fe   : > { %966 = vst [vmem:[%s1293_s8 + $0x60] sm:$0xff] %v938_v51  }
 0x201   : > { %v634_v52 = vpop.f32.mrf.mxu2 }
 0x202   : > { %v635_v54 = vadd.f32 %v1285_v4, %v634_v52 }
 0x209   : > { %v636_v53 = vpop.f32.mrf.mxu2 }
 0x20a   : > { %v637_v55 = vadd.f32 %v1285_v4, %v636_v53 }
 0x20c   : > { %v943_v56 = vpack.c.bf16 %v637_v55, %v635_v54 }
 0x20e   : > { %967 = vst [vmem:[%s1293_s8 + $0x68] sm:$0xff] %v943_v56  }
 0x211   : > { %v639_v57 = vpop.f32.mrf.mxu2 }
 0x212   : > { %v640_v59 = vadd.f32 %v1285_v4, %v639_v57 }
 0x219   : > { %v641_v58 = vpop.f32.mrf.mxu2 }
 0x21a   : > { %v642_v60 = vadd.f32 %v1285_v4, %v641_v58 }
 0x21c   : > { %v948_v61 = vpack.c.bf16 %v642_v60, %v640_v59 }
 0x21e   : > { %968 = vst [vmem:[%s1293_s8 + $0x70] sm:$0xff] %v948_v61  }
 0x221   : > { %v644_v62 = vpop.f32.mrf.mxu2 }
 0x222   : > { %v645_v0 = vadd.f32 %v1285_v4, %v644_v62 }
 0x229   : > { %v646_v63 = vpop.f32.mrf.mxu2 }
 0x22a   : > { %v647_v1 = vadd.f32 %v1285_v4, %v646_v63 }
 0x22c   : > { %v953_v2 = vpack.c.bf16 %v647_v1, %v645_v0 }
 0x22e   : > { %969 = vst [vmem:[%s1293_s8 + $0x78] sm:$0xff] %v953_v2  }
 0x22f   : > { %1051 = shalt.err (!%p1048_p3)
}
 0x230   : > { %s1088_s15 = smov 64   ;;  %s1089_s7 = smov 4  }
 0x231   : > { %981 = dma.vmem_to_hbm [thread:$0]  (%p1158_p5), %s727_s13, 2048, %s729_s14, %s714_s16, %s1088_s15, %s1088_s15, %s1089_s7  }
 0x232 PF: > { %p987_p4 = scmp.ge.s32.totalorder %s1086_s21, 2  ;;  %s743_s8 = sand.u32 1, %s1074_s18  }
 0x233   : > { %s744_s9 = scalar_lea.sflag [#allocation3], %s743_s8 }
 0x234   : > { %p984_p7 = pnand %p987_p4, %p1162_p6 }
 0x236   : > { %p985_p8 = pneg %p984_p7 }
 0x238   : > { %1069 = dma.done.wait (%p985_p8), %s744_s9, 2048  }
 0x239   : > { %1071 = vsyncadd (%p985_p8), %s744_s9, 4294965248  ;;  %p15_p9 = scmp.ge.s32.totalorder %s1145_s24, 4   ;;  %s1395_s18 = smov %s1078_s19 }
 0x23a   : > { %s1396_s19 = smov %s1082_s20  ;;  %s1397_s20 = smov %s1156_s27 }
 0x23b   : > { %s1398_s21 = smov %s1145_s24  ;;  %17 = sbr.rel (!%p15_p9) target bundleno = 3 (0x3), region = 75 }
 0x240   :  { %750 = vsyncpa [#allocation3], 1 }
 0x241   :  { %752 = vsyncpa [#allocation3 + $0x1], 1 }

</bundles_post_ra>
